<compile_context>
chip_gen: v6e
topology: v6e:2x2x1
jax: 0.10.0
libtpu: 0.0.40
codegen_flags: <defaults>
</compile_context>

<pallas_src>
from functools import partial

import numpy as np
import jax
import jax.numpy as jnp
from jax.experimental import pallas as pl
from jax.experimental.pallas import tpu as pltpu

NUM_CLASSES = 20
FOCAL_ALPHA = 0.25          # cfg.MODEL.LOSS.FOCAL_LOSS_ALPHA
FOCAL_GAMMA = 2.0           # cfg.MODEL.LOSS.FOCAL_LOSS_GAMMA
WEIGHT_DICT = {"loss_ce": 2.0, "loss_bbox": 5.0, "loss_giou": 2.0}

LANE = 128
SUBLANE = 8


def _round_up(x, m):
    return ((x + m - 1) // m) * m


# ----------------------------------------------------------------------------------
# Fused kernel: per-head focal-loss sum + GIoU sum + L1 sum.   grid = (H,)
#   logits_ref : [1, C_pad, R_pad]  classes on sublanes, flattened (batch,query) rows
#                                   on the 128-lane axis (lane-dense)
#   tc_ref     : [1, 1, R_pad]      int32 target class per row (-1 = padded row,
#                                   num_classes = "no object")
#   boxes_ref  : [1, 8, M_pad]      matched pairs, rows 0-3 = src xyxy, rows 4-7 = tgt
#   img_ref    : [1, 4, M_pad]      image_size_xyxy_tgt per matched pair (pad = 1.0)
#   bvalid_ref : [1, 1, M_pad]      1.0 for real pairs, 0.0 for lane padding
#   outputs    : three (1, 1, 128) blocks, each filled once with the per-head sum
# ----------------------------------------------------------------------------------
def _set_criterion_kernel(logits_ref, tc_ref, boxes_ref, img_ref, bvalid_ref,
                          focal_ref, giou_ref, l1_ref, *, num_classes):
    # ---- sigmoid focal loss (sum over all queries x classes of this head) --------
    x = logits_ref[0].astype(jnp.float32)                        # [C_pad, R_pad]
    tc = tc_ref[0]                                               # [1, R_pad] int32
    cls_ids = jax.lax.broadcasted_iota(jnp.int32, x.shape, 0)    # class id per sublane
    cls_valid = (cls_ids < num_classes).astype(jnp.float32)      # mask padded class rows
    row_valid = (tc >= 0).astype(jnp.float32)                    # mask padded lanes
    y = jnp.where((cls_ids == tc) & (cls_ids < num_classes), 1.0, 0.0)   # one-hot

    # numerically-stable BCE-with-logits; sigmoid reuses the same exp(-|x|)
    e = jnp.exp(-jnp.abs(x))
    ce = jnp.maximum(x, 0.0) - x * y + jnp.log1p(e)
    p = jnp.where(x >= 0.0, 1.0, e) / (1.0 + e)                  # == sigmoid(x)
    p_t = p * y + (1.0 - p) * (1.0 - y)
    one_m = 1.0 - p_t
    if FOCAL_GAMMA == 2.0:                                       # compile-time constant
        mod = one_m * one_m                                      # VPU mul, no EUP pow
    else:
        mod = jnp.power(one_m, FOCAL_GAMMA)
    alpha_t = FOCAL_ALPHA * y + (1.0 - FOCAL_ALPHA) * (1.0 - y)
    focal_sum = jnp.sum(alpha_t * ce * mod * (row_valid * cls_valid))

    # ---- box losses: GIoU + L1 over matched pairs of this head -------------------
    boxes = boxes_ref[0].astype(jnp.float32)                     # [8, M_pad]
    img = img_ref[0].astype(jnp.float32)                         # [4, M_pad]
    valid = bvalid_ref[0]                                        # [1, M_pad]

    sx1, sy1, sx2, sy2 = boxes[0:1], boxes[1:2], boxes[2:3], boxes[3:4]
    tx1, ty1, tx2, ty2 = boxes[4:5], boxes[5:6], boxes[6:7], boxes[7:8]
    area_s = (sx2 - sx1) * (sy2 - sy1)
    area_t = (tx2 - tx1) * (ty2 - ty1)
    w = jnp.maximum(jnp.minimum(sx2, tx2) - jnp.maximum(sx1, tx1), 0.0)
    h = jnp.maximum(jnp.minimum(sy2, ty2) - jnp.maximum(sy1, ty1), 0.0)
    inter = w * h
    union = area_s + area_t - inter
    union = jnp.where(valid > 0.5, union, 1.0)      # guard padded lanes only
    iou = inter / union
    area_c = ((jnp.maximum(sx2, tx2) - jnp.minimum(sx1, tx1)) *
              (jnp.maximum(sy2, ty2) - jnp.minimum(sy1, ty1)))
    area_c = jnp.where(valid > 0.5, area_c, 1.0)    # guard padded lanes only
    # TODO(synk): like the torch reference (generalized_box_iou), valid-but-degenerate
    # pairs (union == 0 or area_c == 0) are left unguarded.
    giou = iou - (area_c - union) / area_c
    giou_sum = jnp.sum((1.0 - giou) * valid)        # sum of diag(1 - GIoU)

    l1 = jnp.abs(boxes[0:4] / img - boxes[4:8] / img) * valid    # image-normalized L1
    l1_sum = jnp.sum(l1)

    focal_ref[...] = jnp.full(focal_ref.shape, focal_sum, jnp.float32)
    giou_ref[...] = jnp.full(giou_ref.shape, giou_sum, jnp.float32)
    l1_ref[...] = jnp.full(l1_ref.shape, l1_sum, jnp.float32)


def fused_set_criterion_sums(logits_t, tc_t, boxes_t, img_t, valid_t, num_classes):
    """Returns ([H] focal sums, [H] giou sums, [H] l1 sums)."""
    H, C_pad, R_pad = logits_t.shape
    Mp = boxes_t.shape[-1]
    cost = pl.CostEstimate(
        flops=int(H * (15 * C_pad * R_pad + 40 * Mp)),
        transcendentals=int(2 * H * C_pad * R_pad),
        bytes_accessed=int(4 * (logits_t.size + tc_t.size + boxes_t.size +
                                img_t.size + valid_t.size + 3 * H * LANE)),
    )

    def spec3(shp):
        return pl.BlockSpec(shp, lambda hh: (hh, 0, 0))

    out_spec = pl.BlockSpec((1, 1, LANE), lambda hh: (hh, 0, 0))
    focal, giou, l1 = pl.pallas_call(
        partial(_set_criterion_kernel, num_classes=num_classes),
        out_shape=(jax.ShapeDtypeStruct((H, 1, LANE), jnp.float32),
                   jax.ShapeDtypeStruct((H, 1, LANE), jnp.float32),
                   jax.ShapeDtypeStruct((H, 1, LANE), jnp.float32)),
        grid=(H,),
        in_specs=[spec3((1, C_pad, R_pad)),
                  spec3((1, 1, R_pad)),
                  spec3((1, 8, Mp)),
                  spec3((1, 4, Mp)),
                  spec3((1, 1, Mp))],
        out_specs=(out_spec, out_spec, out_spec),
        compiler_params=pltpu.CompilerParams(dimension_semantics=("parallel",)),
        cost_estimate=cost,
    )(logits_t, tc_t, boxes_t, img_t, valid_t)
    return focal[:, 0, 0], giou[:, 0, 0], l1[:, 0, 0]


# ----------------------------------------------------------------------------------
# Pure-JAX reference math (used when use_pallas=False; identical semantics)
# ----------------------------------------------------------------------------------
def _sigmoid_focal_loss_sum_ref(logits, target_classes):
    x = logits.astype(jnp.float32)
    R, C = x.shape
    y = (jnp.arange(C, dtype=jnp.int32)[None, :] == target_classes[:, None]).astype(jnp.float32)
    p = jax.nn.sigmoid(x)
    ce = jnp.maximum(x, 0.0) - x * y + jnp.log1p(jnp.exp(-jnp.abs(x)))
    p_t = p * y + (1.0 - p) * (1.0 - y)
    loss = ce * jnp.power(1.0 - p_t, FOCAL_GAMMA)
    alpha_t = FOCAL_ALPHA * y + (1.0 - FOCAL_ALPHA) * (1.0 - y)
    return jnp.sum(alpha_t * loss)


def _box_loss_sums_ref(src, tgt, img):
    sx1, sy1, sx2, sy2 = src[:, 0], src[:, 1], src[:, 2], src[:, 3]
    tx1, ty1, tx2, ty2 = tgt[:, 0], tgt[:, 1], tgt[:, 2], tgt[:, 3]
    area_s = (sx2 - sx1) * (sy2 - sy1)
    area_t = (tx2 - tx1) * (ty2 - ty1)
    inter = (jnp.maximum(jnp.minimum(sx2, tx2) - jnp.maximum(sx1, tx1), 0.0) *
             jnp.maximum(jnp.minimum(sy2, ty2) - jnp.maximum(sy1, ty1), 0.0))
    union = area_s + area_t - inter
    iou = inter / union
    area_c = ((jnp.maximum(sx2, tx2) - jnp.minimum(sx1, tx1)) *
              (jnp.maximum(sy2, ty2) - jnp.minimum(sy1, ty1)))
    giou = iou - (area_c - union) / area_c
    l1 = jnp.sum(jnp.abs(src / img - tgt / img))
    return jnp.sum(1.0 - giou), l1


# ----------------------------------------------------------------------------------
# Matcher stand-in (injected dependency of the torch module)
# ----------------------------------------------------------------------------------
def simple_matcher(outputs, targets, T=None, t=None):
    # TODO(synk): Hungarian assignment (scipy.optimize.linear_sum_assignment) is a
    # data-dependent sequential algorithm with no clean Pallas equivalent; a
    # deterministic identity matching stands in for the external `matcher` module.
    indices = []
    for i, tgt in enumerate(targets):
        ng = int(tgt["gt_classes"].shape[0])
        idx = jnp.arange(ng, dtype=jnp.int32)
        indices.append((idx, idx))
    return indices


# ----------------------------------------------------------------------------------
# SetCriterion (forward pass semantics)
# ----------------------------------------------------------------------------------
class SetCriterionPallas:
    def __init__(self, num_classes, matcher, weight_dict, eos_coef, losses,
                 use_focal=True, num_heads=6, use_pallas=True):
        self.num_classes = num_classes
        self.matcher = matcher
        self.weight_dict = weight_dict
        self.eos_coef = eos_coef
        self.losses = losses
        self.use_focal = use_focal
        self.num_heads = num_heads
        self.use_pallas = use_pallas
        # buffer from the torch module (only consumed on the non-focal path)
        self.empty_weight = jnp.ones((num_classes + 1,), jnp.float32).at[-1].set(eos_coef)
        if not use_focal:
            # TODO(synk): weighted cross-entropy (non-focal) classification path not ported.
            raise NotImplementedError("only the use_focal=True path is implemented")

    # --- per-head helpers shared by both paths ------------------------------------
    @staticmethod
    def _src_permutation(indices):
        batch_idx = jnp.concatenate(
            [jnp.full(src.shape, b, jnp.int32) for b, (src, _) in enumerate(indices)])
        src_idx = jnp.concatenate([src for src, _ in indices]).astype(jnp.int32)
        return batch_idx, src_idx

    # --- pure-JAX reference losses (use_pallas=False path) -------------------------
    def loss_labels(self, outputs, targets, indices, num_boxes, log=False):
        src_logits = outputs["pred_logits"]
        B, N, C = src_logits.shape
        batch_idx, src_idx = self._src_permutation(indices)
        tgt_cls = jnp.concatenate(
            [targets[b]["gt_classes"][j] for b, (_, j) in enumerate(indices)]).astype(jnp.int32)
        target_classes = jnp.full((B, N), self.num_classes, jnp.int32)
        target_classes = target_classes.at[batch_idx, src_idx].set(tgt_cls)
        class_loss = _sigmoid_focal_loss_sum_ref(
            src_logits.reshape(B * N, C), target_classes.reshape(B * N)) / num_boxes
        return {"loss_ce": class_loss}

    def loss_boxes(self, outputs, targets, indices, num_boxes):
        batch_idx, src_idx = self._src_permutation(indices)
        src_boxes = outputs["pred_boxes"][batch_idx, src_idx]
        tgt_boxes = jnp.concatenate(
            [targets[b]["gt_boxes"][j] for b, (_, j) in enumerate(indices)], axis=0)
        img_size = jnp.concatenate(
            [targets[b]["image_size_xyxy_tgt"][j] for b, (_, j) in enumerate(indices)], axis=0)
        giou_sum, l1_sum = _box_loss_sums_ref(src_boxes, tgt_boxes, img_size)
        return {"loss_giou": giou_sum / num_boxes, "loss_bbox": l1_sum / num_boxes}

    def get_loss(self, loss, outputs, targets, indices, num_boxes, **kwargs):
        loss_map = {"labels": self.loss_labels, "boxes": self.loss_boxes}
        assert loss in loss_map
        return loss_map[loss](outputs, targets, indices, num_boxes, **kwargs)

    # --- fused Pallas path ----------------------------------------------------------
    def _fused_losses(self, head_outputs, head_indices, head_names, targets, num_boxes):
        H = len(head_outputs)
        B, N, C = head_outputs[0]["pred_logits"].shape
        R = B * N
        R_pad = _round_up(max(R, 1), LANE)
        C_pad = _round_up(C, SUBLANE)

        # ---- classification inputs ------------------------------------------------
        if "labels" in self.losses:
            logits_all = jnp.stack(
                [o["pred_logits"].reshape(R, C) for o in head_outputs], axis=0)   # [H,R,C]
            logits_t = jnp.pad(jnp.transpose(logits_all, (0, 2, 1)),
                               ((0, 0), (0, C_pad - C), (0, R_pad - R)))          # [H,Cp,Rp]

            # single scatter across all (head, batch, query) matched positions
            h_ids, b_ids, s_ids, cls_vals = [], [], [], []
            for h, indices in enumerate(head_indices):
                for b, (src, tgt) in enumerate(indices):
                    h_ids.append(jnp.full(src.shape, h, jnp.int32))
                    b_ids.append(jnp.full(src.shape, b, jnp.int32))
                    s_ids.append(src.astype(jnp.int32))
                    cls_vals.append(targets[b]["gt_classes"][tgt].astype(jnp.int32))
            tc = jnp.full((H, B, N), self.num_classes, jnp.int32)
            tc = tc.at[jnp.concatenate(h_ids), jnp.concatenate(b_ids),
                       jnp.concatenate(s_ids)].set(jnp.concatenate(cls_vals))
            tc_t = jnp.pad(tc.reshape(H, 1, R), ((0, 0), (0, 0), (0, R_pad - R)),
                           constant_values=-1)
        else:
            logits_t = jnp.zeros((H, C_pad, R_pad), jnp.float32)
            tc_t = jnp.full((H, 1, R_pad), -1, jnp.int32)

        # ---- box inputs -------------------------------------------------------------
        if "boxes" in self.losses:
            pair_list, img_list = [], []
            for h, indices in enumerate(head_indices):
                batch_idx, src_idx = self._src_permutation(indices)
                src_b = head_outputs[h]["pred_boxes"][batch_idx, src_idx]            # [M,4]
                tgt_b = jnp.concatenate(
                    [targets[b]["gt_boxes"][j] for b, (_, j) in enumerate(indices)], axis=0)
                img_b = jnp.concatenate(
                    [targets[b]["image_size_xyxy_tgt"][j] for b, (_, j) in enumerate(indices)],
                    axis=0)
                pair_list.append(jnp.concatenate([src_b, tgt_b], axis=1))             # [M,8]
                img_list.append(img_b)
            M = int(pair_list[0].shape[0])
            M_pad = _round_up(max(M, 1), LANE)
            boxes_t = jnp.pad(jnp.transpose(jnp.stack(pair_list, axis=0), (0, 2, 1)),
                              ((0, 0), (0, 0), (0, M_pad - M)))                       # [H,8,Mp]
            img_t = jnp.pad(jnp.transpose(jnp.stack(img_list, axis=0), (0, 2, 1)),
                            ((0, 0), (0, 0), (0, M_pad - M)), constant_values=1.0)    # [H,4,Mp]
            valid_t = jnp.pad(jnp.ones((H, 1, M), jnp.float32),
                              ((0, 0), (0, 0), (0, M_pad - M)))                       # [H,1,Mp]
        else:
            M_pad = LANE
            boxes_t = jnp.zeros((H, 8, M_pad), jnp.float32)
            img_t = jnp.ones((H, 4, M_pad), jnp.float32)
            valid_t = jnp.zeros((H, 1, M_pad), jnp.float32)

        focal_sums, giou_sums, l1_sums = fused_set_criterion_sums(
            logits_t, tc_t, boxes_t, img_t, valid_t, self.num_classes)

        losses = {}
        if "labels" in self.losses:
            focal = focal_sums / num_boxes
            for h, name in enumerate(head_names):
                losses[f"loss_ce{name}"] = focal[h]
        if "boxes" in self.losses:
            giou = giou_sums / num_boxes
            l1 = l1_sums / num_boxes
            for h, name in enumerate(head_names):
                losses[f"loss_giou{name}"] = giou[h]
                losses[f"loss_bbox{name}"] = l1[h]
        return losses

    # --- forward ------------------------------------------------------------------
    def __call__(self, outputs, targets):
        outputs_without_aux = {k: v for k, v in outputs.items() if k != "aux_outputs"}
        main_indices = self.matcher(outputs_without_aux, targets,
                                    T=self.num_heads, t=self.num_heads)
        num_boxes = float(sum(int(j.shape[0]) for _, j in main_indices))
        # clamp: avoid inf/NaN when there are zero GT boxes (applied to both paths)
        num_boxes = jnp.maximum(jnp.asarray(num_boxes, jnp.float32), 1.0)

        head_outputs = [outputs_without_aux]
        head_indices = [main_indices]
        head_names = [""]
        if "aux_outputs" in outputs:
            for i, aux_outputs in enumerate(outputs["aux_outputs"]):
                head_outputs.append(aux_outputs)
                head_indices.append(self.matcher(aux_outputs, targets,
                                                 T=self.num_heads, t=i + 1))
                head_names.append(f"_{i}")

        if self.use_pallas:
            losses = self._fused_losses(head_outputs, head_indices, head_names,
                                        targets, num_boxes)
        else:
            losses = {}
            for out_h, ind_h, name in zip(head_outputs, head_indices, head_names):
                for loss in self.losses:
                    if name and loss == "masks":
                        continue
                    kwargs = {"log": False} if (name and loss == "labels") else {}
                    l_dict = self.get_loss(loss, out_h, targets, ind_h, num_boxes, **kwargs)
                    losses.update({f"{k}{name}": v for k, v in l_dict.items()})

        weighted_loss = jnp.asarray(0.0, jnp.float32)
        for loss_name in list(losses.keys()):
            for weight_name, w in self.weight_dict.items():
                if weight_name in loss_name:
                    weighted_loss = weighted_loss + losses[loss_name] * w
        losses["weighted_loss"] = weighted_loss
        return losses


# ----------------------------------------------------------------------------------
# Example driver
# ----------------------------------------------------------------------------------
def make_boxes(key, n, w, h):
    k1, k2, k3, k4 = jax.random.split(key, 4)
    x1 = jax.random.uniform(k1, (n,), minval=0.0, maxval=0.6 * w)
    y1 = jax.random.uniform(k2, (n,), minval=0.0, maxval=0.6 * h)
    bw = jax.random.uniform(k3, (n,), minval=4.0, maxval=0.35 * w)
    bh = jax.random.uniform(k4, (n,), minval=4.0, maxval=0.35 * h)
    return jnp.stack([x1, y1, x1 + bw, y1 + bh], axis=-1).astype(jnp.float32)


if __name__ == "__main__":
    key = jax.random.PRNGKey(0)
    B, N, C, NG = 2, 8, NUM_CLASSES, 3
    IMG_W, IMG_H = 128.0, 96.0
    ks = jax.random.split(key, 8)

    pred_logits = jax.random.normal(ks[0], (B, N, C), jnp.float32)
    pred_boxes = jnp.stack([make_boxes(ks[1 + i], N, IMG_W, IMG_H) for i in range(B)])
    aux_logits = jax.random.normal(ks[3], (B, N, C), jnp.float32)
    aux_boxes = jnp.stack([make_boxes(ks[4 + i], N, IMG_W, IMG_H) for i in range(B)])

    targets = []
    for i in range(B):
        kc, kb = jax.random.split(ks[6 + i])
        targets.append({
            "gt_classes": jax.random.randint(kc, (NG,), 0, C),
            "gt_boxes": make_boxes(kb, NG, IMG_W, IMG_H),
            "image_size_xyxy_tgt": jnp.tile(
                jnp.array([IMG_W, IMG_H, IMG_W, IMG_H], jnp.float32), (NG, 1)),
        })

    outputs = {
        "pred_logits": pred_logits,
        "pred_boxes": pred_boxes,
        "aux_outputs": [{"pred_logits": aux_logits, "pred_boxes": aux_boxes}],
    }

    criterion = SetCriterionPallas(
        num_classes=C, matcher=simple_matcher, weight_dict=WEIGHT_DICT,
        eos_coef=0.1, losses=["labels", "boxes"], use_focal=True,
        num_heads=6, use_pallas=True)
    criterion_ref = SetCriterionPallas(
        num_classes=C, matcher=simple_matcher, weight_dict=WEIGHT_DICT,
        eos_coef=0.1, losses=["labels", "boxes"], use_focal=True,
        num_heads=6, use_pallas=False)

    losses = criterion(outputs, targets)
    losses = {k: jax.block_until_ready(v) for k, v in losses.items()}
    ref_losses = criterion_ref(outputs, targets)

    for k in losses:
        np.testing.assert_allclose(np.asarray(losses[k]), np.asarray(ref_losses[k]),
                                   rtol=5e-4, atol=1e-5)
    print("KERNEL_OK")
</pallas_src>

<mosaic_0001>
module attributes {stable_mosaic.version = 11 : i64} {
  func.func @_set_criterion_kernel(%arg0: i32, %arg1: memref<1x24x128xf32, #tpu.memory_space<vmem>>, %arg2: memref<1x1x128xi32, #tpu.memory_space<vmem>>, %arg3: memref<1x8x128xf32, #tpu.memory_space<vmem>>, %arg4: memref<1x4x128xf32, #tpu.memory_space<vmem>>, %arg5: memref<1x1x128xf32, #tpu.memory_space<vmem>>, %arg6: memref<1x1x128xf32, #tpu.memory_space<vmem>>, %arg7: memref<1x1x128xf32, #tpu.memory_space<vmem>>, %arg8: memref<1x1x128xf32, #tpu.memory_space<vmem>>) attributes {dimension_semantics = [#tpu.dimension_semantics<parallel>], iteration_bounds = array<i64: 2>, scalar_prefetch = 0 : i64, scratch_operands = 0 : i64, tpu.core_type = #tpu.core_type<tc>, window_params = [{transform_indices = @transform_0, window_bounds = array<i64: 1, 24, 128>}, {transform_indices = @transform_1, window_bounds = array<i64: 1, 1, 128>}, {transform_indices = @transform_2, window_bounds = array<i64: 1, 8, 128>}, {transform_indices = @transform_3, window_bounds = array<i64: 1, 4, 128>}, {transform_indices = @transform_4, window_bounds = array<i64: 1, 1, 128>}, {transform_indices = @transform_5, window_bounds = array<i64: 1, 1, 128>}, {transform_indices = @transform_6, window_bounds = array<i64: 1, 1, 128>}, {transform_indices = @transform_7, window_bounds = array<i64: 1, 1, 128>}]} {
    %c0 = arith.constant 0 : index
    %c0_0 = arith.constant 0 : index
    %c0_1 = arith.constant 0 : index
    %0 = vector.load %arg1[%c0, %c0_0, %c0_1] : memref<1x24x128xf32, #tpu.memory_space<vmem>>, vector<1x24x128xf32>
    %1 = vector.shape_cast %0 : vector<1x24x128xf32> to vector<24x128xf32>
    %c0_2 = arith.constant 0 : index
    %c0_3 = arith.constant 0 : index
    %c0_4 = arith.constant 0 : index
    %2 = vector.load %arg2[%c0_2, %c0_3, %c0_4] : memref<1x1x128xi32, #tpu.memory_space<vmem>>, vector<1x1x128xi32>
    %3 = vector.shape_cast %2 : vector<1x1x128xi32> to vector<1x128xi32>
    %4 = tpu.iota {dimensions = array<i32: 0>} : vector<24x128xi32>
    %c20_i32 = arith.constant 20 : i32
    %5 = vector.broadcast %c20_i32 : i32 to vector<24x128xi32>
    %6 = arith.cmpi slt, %4, %5 : vector<24x128xi32>
    %7 = arith.extui %6 : vector<24x128xi1> to vector<24x128xi32>
    %8 = arith.sitofp %7 : vector<24x128xi32> to vector<24x128xf32>
    %c0_i32 = arith.constant 0 : i32
    %9 = vector.broadcast %c0_i32 : i32 to vector<1x128xi32>
    %10 = arith.cmpi sge, %3, %9 : vector<1x128xi32>
    %11 = arith.extui %10 : vector<1x128xi1> to vector<1x128xi32>
    %12 = arith.sitofp %11 : vector<1x128xi32> to vector<1x128xf32>
    %13 = vector.broadcast %3 : vector<1x128xi32> to vector<24x128xi32>
    %14 = arith.cmpi eq, %4, %13 : vector<24x128xi32>
    %c20_i32_5 = arith.constant 20 : i32
    %15 = vector.broadcast %c20_i32_5 : i32 to vector<24x128xi32>
    %16 = arith.cmpi slt, %4, %15 : vector<24x128xi32>
    %17 = arith.andi %14, %16 : vector<24x128xi1>
    %cst = arith.constant 1.000000e+00 : f32
    %cst_6 = arith.constant 0.000000e+00 : f32
    %18 = vector.broadcast %cst : f32 to vector<24x128xf32>
    %19 = vector.broadcast %cst_6 : f32 to vector<24x128xf32>
    %20 = arith.select %17, %18, %19 : vector<24x128xi1>, vector<24x128xf32>
    %21 = math.absf %1 : vector<24x128xf32>
    %cst_7 = arith.constant 0.000000e+00 : f32
    %22 = vector.broadcast %cst_7 : f32 to vector<24x128xf32>
    %23 = arith.subf %22, %21 : vector<24x128xf32>
    %24 = math.exp %23 : vector<24x128xf32>
    %cst_8 = arith.constant 0.000000e+00 : f32
    %25 = vector.broadcast %cst_8 : f32 to vector<24x128xf32>
    %26 = arith.maximumf %1, %25 : vector<24x128xf32>
    %27 = arith.mulf %1, %20 : vector<24x128xf32>
    %28 = arith.subf %26, %27 : vector<24x128xf32>
    %29 = math.log1p %24 : vector<24x128xf32>
    %30 = arith.addf %28, %29 : vector<24x128xf32>
    %cst_9 = arith.constant 0.000000e+00 : f32
    %31 = vector.broadcast %cst_9 : f32 to vector<24x128xf32>
    %32 = arith.cmpf oge, %1, %31 : vector<24x128xf32>
    %cst_10 = arith.constant 1.000000e+00 : f32
    %33 = vector.broadcast %cst_10 : f32 to vector<24x128xf32>
    %34 = arith.select %32, %33, %24 : vector<24x128xi1>, vector<24x128xf32>
    %cst_11 = arith.constant 1.000000e+00 : f32
    %35 = vector.broadcast %cst_11 : f32 to vector<24x128xf32>
    %36 = arith.addf %35, %24 : vector<24x128xf32>
    %37 = arith.divf %34, %36 : vector<24x128xf32>
    %38 = arith.mulf %37, %20 : vector<24x128xf32>
    %cst_12 = arith.constant 1.000000e+00 : f32
    %39 = vector.broadcast %cst_12 : f32 to vector<24x128xf32>
    %40 = arith.subf %39, %37 : vector<24x128xf32>
    %cst_13 = arith.constant 1.000000e+00 : f32
    %41 = vector.broadcast %cst_13 : f32 to vector<24x128xf32>
    %42 = arith.subf %41, %20 : vector<24x128xf32>
    %43 = arith.mulf %40, %42 : vector<24x128xf32>
    %44 = arith.addf %38, %43 : vector<24x128xf32>
    %cst_14 = arith.constant 1.000000e+00 : f32
    %45 = vector.broadcast %cst_14 : f32 to vector<24x128xf32>
    %46 = arith.subf %45, %44 : vector<24x128xf32>
    %47 = arith.mulf %46, %46 : vector<24x128xf32>
    %cst_15 = arith.constant 2.500000e-01 : f32
    %48 = vector.broadcast %cst_15 : f32 to vector<24x128xf32>
    %49 = arith.mulf %48, %20 : vector<24x128xf32>
    %cst_16 = arith.constant 1.000000e+00 : f32
    %50 = vector.broadcast %cst_16 : f32 to vector<24x128xf32>
    %51 = arith.subf %50, %20 : vector<24x128xf32>
    %cst_17 = arith.constant 7.500000e-01 : f32
    %52 = vector.broadcast %cst_17 : f32 to vector<24x128xf32>
    %53 = arith.mulf %52, %51 : vector<24x128xf32>
    %54 = arith.addf %49, %53 : vector<24x128xf32>
    %55 = arith.mulf %54, %30 : vector<24x128xf32>
    %56 = arith.mulf %55, %47 : vector<24x128xf32>
    %57 = vector.broadcast %12 : vector<1x128xf32> to vector<24x128xf32>
    %58 = arith.mulf %57, %8 : vector<24x128xf32>
    %59 = arith.mulf %56, %58 : vector<24x128xf32>
    %60 = vector.shape_cast %59 : vector<24x128xf32> to vector<1x24x128xf32>
    %cst_18 = arith.constant dense<0.000000e+00> : vector<1xf32>
    %61 = vector.multi_reduction <add>, %60, %cst_18 [1, 2] : vector<1x24x128xf32> to vector<1xf32>
    %62 = vector.shape_cast %61 : vector<1xf32> to vector<1x1x1xf32>
    %63 = vector.extract %62[0, 0, 0] : f32 from vector<1x1x1xf32>
    %c0_19 = arith.constant 0 : index
    %c0_20 = arith.constant 0 : index
    %c0_21 = arith.constant 0 : index
    %64 = vector.load %arg3[%c0_19, %c0_20, %c0_21] : memref<1x8x128xf32, #tpu.memory_space<vmem>>, vector<1x8x128xf32>
    %65 = vector.shape_cast %64 : vector<1x8x128xf32> to vector<8x128xf32>
    %c0_22 = arith.constant 0 : index
    %c0_23 = arith.constant 0 : index
    %c0_24 = arith.constant 0 : index
    %66 = vector.load %arg4[%c0_22, %c0_23, %c0_24] : memref<1x4x128xf32, #tpu.memory_space<vmem>>, vector<1x4x128xf32>
    %67 = vector.shape_cast %66 : vector<1x4x128xf32> to vector<4x128xf32>
    %c0_25 = arith.constant 0 : index
    %c0_26 = arith.constant 0 : index
    %c0_27 = arith.constant 0 : index
    %68 = vector.load %arg5[%c0_25, %c0_26, %c0_27] : memref<1x1x128xf32, #tpu.memory_space<vmem>>, vector<1x1x128xf32>
    %69 = vector.shape_cast %68 : vector<1x1x128xf32> to vector<1x128xf32>
    %70 = vector.extract_strided_slice %65 {offsets = [0, 0], sizes = [1, 128], strides = [1, 1]} : vector<8x128xf32> to vector<1x128xf32>
    %71 = vector.extract_strided_slice %65 {offsets = [1, 0], sizes = [1, 128], strides = [1, 1]} : vector<8x128xf32> to vector<1x128xf32>
    %72 = vector.extract_strided_slice %65 {offsets = [2, 0], sizes = [1, 128], strides = [1, 1]} : vector<8x128xf32> to vector<1x128xf32>
    %73 = vector.extract_strided_slice %65 {offsets = [3, 0], sizes = [1, 128], strides = [1, 1]} : vector<8x128xf32> to vector<1x128xf32>
    %74 = vector.extract_strided_slice %65 {offsets = [4, 0], sizes = [1, 128], strides = [1, 1]} : vector<8x128xf32> to vector<1x128xf32>
    %75 = vector.extract_strided_slice %65 {offsets = [5, 0], sizes = [1, 128], strides = [1, 1]} : vector<8x128xf32> to vector<1x128xf32>
    %76 = vector.extract_strided_slice %65 {offsets = [6, 0], sizes = [1, 128], strides = [1, 1]} : vector<8x128xf32> to vector<1x128xf32>
    %77 = vector.extract_strided_slice %65 {offsets = [7, 0], sizes = [1, 128], strides = [1, 1]} : vector<8x128xf32> to vector<1x128xf32>
    %78 = arith.subf %72, %70 : vector<1x128xf32>
    %79 = arith.subf %73, %71 : vector<1x128xf32>
    %80 = arith.mulf %78, %79 : vector<1x128xf32>
    %81 = arith.subf %76, %74 : vector<1x128xf32>
    %82 = arith.subf %77, %75 : vector<1x128xf32>
    %83 = arith.mulf %81, %82 : vector<1x128xf32>
    %84 = arith.minimumf %72, %76 : vector<1x128xf32>
    %85 = arith.maximumf %70, %74 : vector<1x128xf32>
    %86 = arith.subf %84, %85 : vector<1x128xf32>
    %cst_28 = arith.constant 0.000000e+00 : f32
    %87 = vector.broadcast %cst_28 : f32 to vector<1x128xf32>
    %88 = arith.maximumf %86, %87 : vector<1x128xf32>
    %89 = arith.minimumf %73, %77 : vector<1x128xf32>
    %90 = arith.maximumf %71, %75 : vector<1x128xf32>
    %91 = arith.subf %89, %90 : vector<1x128xf32>
    %cst_29 = arith.constant 0.000000e+00 : f32
    %92 = vector.broadcast %cst_29 : f32 to vector<1x128xf32>
    %93 = arith.maximumf %91, %92 : vector<1x128xf32>
    %94 = arith.mulf %88, %93 : vector<1x128xf32>
    %95 = arith.addf %80, %83 : vector<1x128xf32>
    %96 = arith.subf %95, %94 : vector<1x128xf32>
    %cst_30 = arith.constant 5.000000e-01 : f32
    %97 = vector.broadcast %cst_30 : f32 to vector<1x128xf32>
    %98 = arith.cmpf ogt, %69, %97 : vector<1x128xf32>
    %cst_31 = arith.constant 1.000000e+00 : f32
    %99 = vector.broadcast %cst_31 : f32 to vector<1x128xf32>
    %100 = arith.select %98, %96, %99 : vector<1x128xi1>, vector<1x128xf32>
    %101 = arith.divf %94, %100 : vector<1x128xf32>
    %102 = arith.maximumf %72, %76 : vector<1x128xf32>
    %103 = arith.minimumf %70, %74 : vector<1x128xf32>
    %104 = arith.subf %102, %103 : vector<1x128xf32>
    %105 = arith.maximumf %73, %77 : vector<1x128xf32>
    %106 = arith.minimumf %71, %75 : vector<1x128xf32>
    %107 = arith.subf %105, %106 : vector<1x128xf32>
    %108 = arith.mulf %104, %107 : vector<1x128xf32>
    %cst_32 = arith.constant 5.000000e-01 : f32
    %109 = vector.broadcast %cst_32 : f32 to vector<1x128xf32>
    %110 = arith.cmpf ogt, %69, %109 : vector<1x128xf32>
    %cst_33 = arith.constant 1.000000e+00 : f32
    %111 = vector.broadcast %cst_33 : f32 to vector<1x128xf32>
    %112 = arith.select %110, %108, %111 : vector<1x128xi1>, vector<1x128xf32>
    %113 = arith.subf %112, %100 : vector<1x128xf32>
    %114 = arith.divf %113, %112 : vector<1x128xf32>
    %115 = arith.subf %101, %114 : vector<1x128xf32>
    %cst_34 = arith.constant 1.000000e+00 : f32
    %116 = vector.broadcast %cst_34 : f32 to vector<1x128xf32>
    %117 = arith.subf %116, %115 : vector<1x128xf32>
    %118 = arith.mulf %117, %69 : vector<1x128xf32>
    %119 = vector.shape_cast %118 : vector<1x128xf32> to vector<1x1x128xf32>
    %cst_35 = arith.constant dense<0.000000e+00> : vector<1xf32>
    %120 = vector.multi_reduction <add>, %119, %cst_35 [1, 2] : vector<1x1x128xf32> to vector<1xf32>
    %121 = vector.shape_cast %120 : vector<1xf32> to vector<1x1x1xf32>
    %122 = vector.extract %121[0, 0, 0] : f32 from vector<1x1x1xf32>
    %123 = vector.extract_strided_slice %65 {offsets = [0, 0], sizes = [4, 128], strides = [1, 1]} : vector<8x128xf32> to vector<4x128xf32>
    %124 = arith.divf %123, %67 : vector<4x128xf32>
    %125 = vector.extract_strided_slice %65 {offsets = [4, 0], sizes = [4, 128], strides = [1, 1]} : vector<8x128xf32> to vector<4x128xf32>
    %126 = arith.divf %125, %67 : vector<4x128xf32>
    %127 = arith.subf %124, %126 : vector<4x128xf32>
    %128 = math.absf %127 : vector<4x128xf32>
    %129 = vector.broadcast %69 : vector<1x128xf32> to vector<4x128xf32>
    %130 = arith.mulf %128, %129 : vector<4x128xf32>
    %131 = vector.shape_cast %130 : vector<4x128xf32> to vector<1x4x128xf32>
    %cst_36 = arith.constant dense<0.000000e+00> : vector<1xf32>
    %132 = vector.multi_reduction <add>, %131, %cst_36 [1, 2] : vector<1x4x128xf32> to vector<1xf32>
    %133 = vector.shape_cast %132 : vector<1xf32> to vector<1x1x1xf32>
    %134 = vector.extract %133[0, 0, 0] : f32 from vector<1x1x1xf32>
    %135 = vector.broadcast %63 : f32 to vector<1x1x128xf32>
    %c0_37 = arith.constant 0 : index
    %c0_38 = arith.constant 0 : index
    %c0_39 = arith.constant 0 : index
    %136 = vector.load %arg6[%c0_37, %c0_38, %c0_39] : memref<1x1x128xf32, #tpu.memory_space<vmem>>, vector<1x1x128xf32>
    tpu.vector_store %arg6[%c0_37, %c0_38, %c0_39], %135 {strides = array<i32>} : memref<1x1x128xf32, #tpu.memory_space<vmem>>, vector<1x1x128xf32>,
    %137 = vector.broadcast %122 : f32 to vector<1x1x128xf32>
    %c0_40 = arith.constant 0 : index
    %c0_41 = arith.constant 0 : index
    %c0_42 = arith.constant 0 : index
    %138 = vector.load %arg7[%c0_40, %c0_41, %c0_42] : memref<1x1x128xf32, #tpu.memory_space<vmem>>, vector<1x1x128xf32>
    tpu.vector_store %arg7[%c0_40, %c0_41, %c0_42], %137 {strides = array<i32>} : memref<1x1x128xf32, #tpu.memory_space<vmem>>, vector<1x1x128xf32>,
    %139 = vector.broadcast %134 : f32 to vector<1x1x128xf32>
    %c0_43 = arith.constant 0 : index
    %c0_44 = arith.constant 0 : index
    %c0_45 = arith.constant 0 : index
    %140 = vector.load %arg8[%c0_43, %c0_44, %c0_45] : memref<1x1x128xf32, #tpu.memory_space<vmem>>, vector<1x1x128xf32>
    tpu.vector_store %arg8[%c0_43, %c0_44, %c0_45], %139 {strides = array<i32>} : memref<1x1x128xf32, #tpu.memory_space<vmem>>, vector<1x1x128xf32>,
    return
  }
  func.func @transform_0(%arg0: i32) -> (i32, i32, i32) {
    %c0_i32 = arith.constant 0 : i32
    %c0_i32_0 = arith.constant 0 : i32
    %c0_i32_1 = arith.constant 0 : i32
    return %arg0, %c0_i32, %c0_i32_0 : i32, i32, i32
  }
  func.func @transform_1(%arg0: i32) -> (i32, i32, i32) {
    %c0_i32 = arith.constant 0 : i32
    %c0_i32_0 = arith.constant 0 : i32
    %c0_i32_1 = arith.constant 0 : i32
    return %arg0, %c0_i32, %c0_i32_0 : i32, i32, i32
  }
  func.func @transform_2(%arg0: i32) -> (i32, i32, i32) {
    %c0_i32 = arith.constant 0 : i32
    %c0_i32_0 = arith.constant 0 : i32
    %c0_i32_1 = arith.constant 0 : i32
    return %arg0, %c0_i32, %c0_i32_0 : i32, i32, i32
  }
  func.func @transform_3(%arg0: i32) -> (i32, i32, i32) {
    %c0_i32 = arith.constant 0 : i32
    %c0_i32_0 = arith.constant 0 : i32
    %c0_i32_1 = arith.constant 0 : i32
    return %arg0, %c0_i32, %c0_i32_0 : i32, i32, i32
  }
  func.func @transform_4(%arg0: i32) -> (i32, i32, i32) {
    %c0_i32 = arith.constant 0 : i32
    %c0_i32_0 = arith.constant 0 : i32
    %c0_i32_1 = arith.constant 0 : i32
    return %arg0, %c0_i32, %c0_i32_0 : i32, i32, i32
  }
  func.func @transform_5(%arg0: i32) -> (i32, i32, i32) {
    %c0_i32 = arith.constant 0 : i32
    %c0_i32_0 = arith.constant 0 : i32
    %c0_i32_1 = arith.constant 0 : i32
    return %arg0, %c0_i32, %c0_i32_0 : i32, i32, i32
  }
  func.func @transform_6(%arg0: i32) -> (i32, i32, i32) {
    %c0_i32 = arith.constant 0 : i32
    %c0_i32_0 = arith.constant 0 : i32
    %c0_i32_1 = arith.constant 0 : i32
    return %arg0, %c0_i32, %c0_i32_0 : i32, i32, i32
  }
  func.func @transform_7(%arg0: i32) -> (i32, i32, i32) {
    %c0_i32 = arith.constant 0 : i32
    %c0_i32_0 = arith.constant 0 : i32
    %c0_i32_1 = arith.constant 0 : i32
    return %arg0, %c0_i32, %c0_i32_0 : i32, i32, i32
  }
}

</mosaic_0001>

<bundles_post_ra>
// kernel: tpu_custom_call.1
= control target key start
LH: loop header
LB: loop body
LE: loop exit
PB: predicated region body
PF: predicated region fallthrough
CT: control target
= control target key end

     0   :  { %s1860_s0 = inlined_call_operand.hbm [shape: f32[2,24,128], index: 0, kind: input, shape index: {}]   ;;  %s1861_s1 = inlined_call_operand.hbm [shape: s32[2,1,128], index: 1, kind: input, shape index: {}]   ;;  %s1862_s2 = inlined_call_operand.hbm [shape: f32[2,8,128], index: 2, kind: input, shape index: {}]   ;;  %s1863_s3 = inlined_call_operand.hbm [shape: f32[2,4,128], index: 3, kind: input, shape index: {}]   ;;  %s1864_s4 = inlined_call_operand.vmem [shape: f32[2,1,128], index: 4, kind: input, shape index: {}]   ;;  %s1865_s5 = inlined_call_operand.hbm [shape: f32[2,1,128], index: 5, kind: output, shape index: {0}]   ;;  %s1866_s6 = inlined_call_operand.hbm [shape: f32[2,1,128], index: 6, kind: output, shape index: {1}]   ;;  %s1867_s7 = inlined_call_operand.hbm [shape: f32[2,1,128], index: 7, kind: output, shape index: {2}]  }
   0x1   :  { %1875 = sst [smem:[#allocation23_spill]] %s1860_s0 }
   0x2   :  { %1876 = sst [smem:[#allocation24_spill]] %s1861_s1 }
   0x3   :  { %13 = vsyncpa [#allocation3], 0 }
   0x4   :  { %15 = vsyncpa [#allocation3 + $0x1], 0 }
   0x5   :  { %16 = vsyncpa [#allocation6], 0 }
   0x6   :  { %18 = vsyncpa [#allocation6 + $0x1], 0 }
   0x7   :  { %19 = vsyncpa [#allocation9], 0 }
   0x8   :  { %21 = vsyncpa [#allocation9 + $0x1], 0 }
   0x9   :  { %22 = vsyncpa [#allocation4], 0 }
   0xa   :  { %24 = vsyncpa [#allocation4 + $0x1], 0 }
   0xb   :  { %25 = vsyncpa [#allocation12], 0 }
   0xc   :  { %27 = vsyncpa [#allocation12 + $0x1], 0  ;;  %s1393_s24 = smov 0   ;;  %s1395_s25 = smov 0  }
   0xd   :  { %s1397_s26 = smov 0   ;;  %s1399_s27 = smov 0  }
   0xe LB: > { %1877 = sst [smem:[#allocation19_spill]] %s1336_s26  ;;  %s1414_s28 = sadd.s32 4294967295, %s1340_s27   ;;  %s1340_s27 = sphi %s1399_s27, %s1902_s27   ;;  %s1336_s26 = sphi %s1397_s26, %s1904_s26   ;;  %s1332_s25 = sphi %s1395_s25, %s1906_s25   ;;  %s1328_s24 = sphi %s1393_s24, %s1905_s24  }
   0xf   : > { %s1868_s29 = sadd.s32 4294967294, %s1340_s27   ;;  %s1418_s30 = sadd.s32 1, %s1340_s27  }
  0x10   : > { %1878 = sst [smem:[#allocation20_spill]] %s1418_s30  ;;  %s40_s8 = sadd.s32 1, %s1336_s26 }
  0x11   : > { %s37_s9 = ssub.s32 %s1340_s27, %s1418_s30  ;;  %p47_p0 = scmp.ne.s32.totalorder %s1336_s26, %s1332_s25 }
  0x12   : > { %p38_p1 = scmp.eq.s32.totalorder %s37_s9, 0  ;;  %p48_p2 = scmp.eq.s32.totalorder %s1340_s27, 0 }
  0x13   : > { %p53_p3 = scmp.ne.s32.totalorder %s1332_s25, %s1328_s24  ;;  %p54_p4 = scmp.eq.s32.totalorder %s1414_s28, 0 }
  0x14   : > { %s1430_s10 = scalar_select %p38_p1, %s1336_s26, %s40_s8  }
  0x15   : > { %p49_p5 = por %p48_p2, %p47_p0  ;;  %p1432_p6 = por %p54_p4, %p53_p3 }
  0x16   : > { %1879 = sst [smem:[#allocation21_spill]] %s1430_s10  ;;  %p181_p7 = scmp.eq.s32.totalorder %s1414_s28, 1 }
  0x17   : > { %s1880_s11 = scalar_select %p1432_p6, 1, 0 }
  0x18   : > { %p187_p8 = scmp.eq.s32.totalorder %s1868_s29, 1  ;;  %p1036_p10 = scmp.lt.s32.totalorder %s1340_s27, 2 }
  0x19   : > { %p1441_p11 = por %p181_p7, %p47_p0  ;;  %s1450_s14 = sand.u32 1, %s1336_s26  }
  0x1a   : > { %p1445_p12 = por %p187_p8, %p53_p3  ;;  %p1452_p13 = pnand %p1036_p10, %p49_p5 }
  0x1b   : > { %s1881_s12 = scalar_select %p1441_p11, 1, 0 }
  0x1c   : > { %s1882_s13 = scalar_select %p1445_p12, 1, 0 }
  0x1d   : > { %s280_s16 = sand.u32 1, %s1340_s27   ;;  %s975_s17 = sshll.u32 %s1340_s27, 4 }
  0x1e   : > { %1883 = sst [smem:[#allocation22_spill]] %s1882_s13  ;;  %s283_s18 = scalar_lea.vmem [#allocation5], %s1450_s14 }
  0x1f   : > { %s290_s19 = sshll.u32 %s283_s18, 4  ;;  %s1885_s1 = sld [smem:[#allocation24_spill]]  ;;  %s291_s19 = int_to_ptr.vmem [resolvable:$true] %s290_s19 }
  0x20   : > { %s1462_s23 = scalar_lea.sflag [#allocation6], %s280_s16  ;;  %p1466_p1 = pneg %p1452_p13 }
  0x25   : > { %s288_s22 = scalar_lea.hbm %s1885_s1, %s975_s17  ;;  %s1105_s10 = scalar_lea.hbm %s1885_s1, 32 }
  0x26   : > { %s1100_s8 = scalar_lea.hbm %s288_s22, 16  ;;  %p1106_p4 = scmp.lt.s32.totalorder %s288_s22, %s1885_s1 }
  0x27   : > { %p1101_p0 = scmp.ne.s32.totalorder %s288_s22, %s1100_s8  ;;  %p1107_p5 = scmp.lt.s32.totalorder %s1105_s10, %s1100_s8 }
  0x29   : > { %p1103_p2 = pnand %p1466_p1, %p1101_p0  ;;  %p1108_p7 = por %p1107_p5, %p1106_p4 }
  0x2b   : > { %p1104_p3 = pneg %p1103_p2 }
  0x2d   : > { %p1109_p8 = pnand %p1108_p7, %p1104_p3 }
  0x2f   : > { %1112 = shalt.err (!%p1109_p8)
}
  0x30   : > { %s1113_s16 = scalar_lea.vmem %s291_s19, 16  ;;  %s1342_s21 = smov [#allocation5]  }
  0x31   : > { %p1114_p10 = scmp.ne.s32.totalorder %s291_s19, %s1113_s16  ;;  %s1118_s26 = sshll.u32 %s1342_s21, 4  ;;  %s1119_s26 = int_to_ptr.vmem [resolvable:$false] %s1118_s26 }
  0x32   : > { %s1120_s30 = scalar_lea.vmem %s1119_s26, 32  ;;  %p1121_p0 = scmp.lt.s32.totalorder %s291_s19, %s1119_s26 }
  0x33   : > { %p1116_p9 = pnand %p1114_p10, %p1466_p1  ;;  %p1122_p2 = scmp.lt.s32.totalorder %s1120_s30, %s1113_s16 }
  0x35   : > { %p1117_p12 = pneg %p1116_p9  ;;  %p1123_p11 = por %p1122_p2, %p1121_p0 }
  0x37   : > { %p1124_p6 = pnand %p1123_p11, %p1117_p12 }
  0x39   : > { %1127 = shalt.err (!%p1124_p6)
}
  0x3a   : > { %1019 = dma.hbm_to_vmem [thread:$0]  (!%p1452_p13), %s288_s22, 16, %s291_s19, %s1462_s23  }
  0x3b   : > { %p980_p9 = scmp.ge.s32.totalorder %s1340_s27, 1  ;;  %p337_p3 = scmp.lt.s32.totalorder %s1340_s27, 3 }
  0x3c   : > { %s990_s29 = smul.u32 24, %s1450_s14  ;;  %s1888_s0 = sld [smem:[#allocation23_spill]] }
  0x3d   : > { %p1486_p4 = pnand %p980_p9, %p337_p3  ;;  %s991_s26 = smul.u32 384, %s1340_s27 }
  0x3e   : > { %s263_s20 = scalar_lea.vmem [#allocation2], %s990_s29  ;;  %s260_s19 = scalar_lea.sflag [#allocation3], %s1450_s14 }
  0x3f   : > { %s1887_s10 = scalar_select %p1486_p4, 1, 0 }
  0x40   : > { %s270_s17 = sshll.u32 %s263_s20, 4  ;;  %s1496_s17 = int_to_ptr.vmem [resolvable:$true] %s270_s17 }
  0x42   : > { %s1494_s18 = scalar_lea.hbm %s1888_s0, %s991_s26  ;;  %s1133_s1 = scalar_lea.hbm %s1888_s0, 768 }
  0x43   : > { %s1128_s22 = scalar_lea.hbm %s1494_s18, 384  ;;  %p1134_p5 = scmp.lt.s32.totalorder %s1494_s18, %s1888_s0 }
  0x44   : > { %p1129_p6 = scmp.ne.s32.totalorder %s1494_s18, %s1128_s22  ;;  %p1135_p7 = scmp.lt.s32.totalorder %s1133_s1, %s1128_s22 }
  0x46   : > { %p1131_p11 = pnand %p1129_p6, %p1466_p1  ;;  %p1136_p8 = por %p1135_p7, %p1134_p5 }
  0x48   : > { %p1132_p12 = pneg %p1131_p11 }
  0x4a   : > { %p1137_p10 = pnand %p1136_p8, %p1132_p12 }
  0x4c   : > { %1140 = shalt.err (!%p1137_p10)
}
  0x4d   : > { %s1141_s29 = scalar_lea.vmem %s1496_s17, 384  ;;  %s1343_s8 = smov [#allocation2]  }
  0x4e   : > { %p1142_p0 = scmp.ne.s32.totalorder %s1496_s17, %s1141_s29  ;;  %s1146_s20 = sshll.u32 %s1343_s8, 4  ;;  %s1147_s20 = int_to_ptr.vmem [resolvable:$false] %s1146_s20 }
  0x4f   : > { %s1148_s16 = scalar_lea.vmem %s1147_s20, 768  ;;  %p1149_p3 = scmp.lt.s32.totalorder %s1496_s17, %s1147_s20 }
  0x50   : > { %p1144_p2 = pnand %p1142_p0, %p1466_p1  ;;  %p1150_p6 = scmp.lt.s32.totalorder %s1148_s16, %s1141_s29 }
  0x52   : > { %p1145_p9 = pneg %p1144_p2  ;;  %p1151_p11 = por %p1150_p6, %p1149_p3 }
  0x54   : > { %p1152_p4 = pnand %p1151_p11, %p1145_p9 }
  0x56   : > { %1155 = shalt.err (!%p1152_p4)
}
  0x57   : > { %s1344_s1 = smov 128   ;;  %s1345_s22 = smov 8  }
  0x58   : > { %1016 = dma.hbm_to_vmem [thread:$0]  (!%p1452_p13), %s1494_s18, 384, %s1496_s17, %s260_s19, %s1344_s1, %s1344_s1, %s1345_s22  }
  0x59   : > { %s976_s21 = sshll.u32 %s1450_s14, 3  ;;  %s977_s30 = sshll.u32 %s1340_s27, 7 }
  0x5a   : > { %s1526_s8 = scalar_lea.hbm %s1862_s2, %s977_s30  ;;  %s301_s20 = scalar_lea.vmem [#allocation7], %s976_s21 }
  0x5b   : > { %s308_s16 = sshll.u32 %s301_s20, 4  ;;  %s978_s0 = sshll.u32 %s1450_s14, 2  ;;  %s309_s16 = int_to_ptr.vmem [resolvable:$true] %s308_s16 }
  0x5c   : > { %s1156_s13 = scalar_lea.hbm %s1526_s8, 128  ;;  %s1161_s19 = scalar_lea.hbm %s1862_s2, 256 }
  0x5d   : > { %p1157_p4 = scmp.ne.s32.totalorder %s1526_s8, %s1156_s13  ;;  %p1162_p7 = scmp.lt.s32.totalorder %s1526_s8, %s1862_s2 }
  0x5e   : > { %p1163_p8 = scmp.lt.s32.totalorder %s1161_s19, %s1156_s13 }
  0x5f   : > { %p1159_p12 = pnand %p1157_p4, %p1466_p1 }
  0x60   : > { %p1164_p10 = por %p1163_p8, %p1162_p7 }
  0x61   : > { %p1160_p5 = pneg %p1159_p12 }
  0x63   : > { %p1165_p0 = pnand %p1164_p10, %p1160_p5 }
  0x65   : > { %1168 = shalt.err (!%p1165_p0)
}
  0x66   : > { %s1169_s21 = scalar_lea.vmem %s309_s16, 128  ;;  %s1346_s30 = smov [#allocation7]  }
  0x67   : > { %p1170_p2 = scmp.ne.s32.totalorder %s309_s16, %s1169_s21  ;;  %s1174_s26 = sshll.u32 %s1346_s30, 4  ;;  %s1175_s26 = int_to_ptr.vmem [resolvable:$false] %s1174_s26 }
  0x68   : > { %s1176_s29 = scalar_lea.vmem %s1175_s26, 256  ;;  %p1177_p6 = scmp.lt.s32.totalorder %s309_s16, %s1175_s26 }
  0x69   : > { %p1172_p9 = pnand %p1170_p2, %p1466_p1  ;;  %p1178_p11 = scmp.lt.s32.totalorder %s1176_s29, %s1169_s21 }
  0x6b   : > { %p1173_p3 = pneg %p1172_p9  ;;  %p1179_p4 = por %p1178_p11, %p1177_p6 }
  0x6d   : > { %p1180_p12 = pnand %p1179_p4, %p1173_p3 }
  0x6f   : > { %1183 = shalt.err (!%p1180_p12)
}
  0x70   : > { %1022 = dma.hbm_to_vmem [thread:$0]  (!%p1452_p13), %s1526_s8, 128, %s309_s16, %s1462_s23  }
  0x71   : > { %s979_s13 = sshll.u32 %s1340_s27, 6  ;;  %s319_s19 = scalar_lea.vmem [#allocation8], %s978_s0 }
  0x72   : > { %s1550_s17 = scalar_lea.hbm %s1863_s3, %s979_s13  ;;  %s326_s1 = sshll.u32 %s319_s19, 4  ;;  %s327_s1 = int_to_ptr.vmem [resolvable:$true] %s326_s1 }
  0x73   : > { %s316_s22 = scalar_lea.sflag [#allocation9], %s1450_s14  ;;  %s1184_s21 = scalar_lea.hbm %s1550_s17, 64 }
  0x74   : > { %p1185_p5 = scmp.ne.s32.totalorder %s1550_s17, %s1184_s21  ;;  %s1189_s8 = scalar_lea.hbm %s1863_s3, 128 }
  0x75   : > { %p1190_p10 = scmp.lt.s32.totalorder %s1550_s17, %s1863_s3  ;;  %p1191_p0 = scmp.lt.s32.totalorder %s1189_s8, %s1184_s21 }
  0x76   : > { %p1187_p7 = pnand %p1185_p5, %p1466_p1 }
  0x77   : > { %p1192_p2 = por %p1191_p0, %p1190_p10 }
  0x78   : > { %p1188_p8 = pneg %p1187_p7 }
  0x7a   : > { %p1193_p9 = pnand %p1192_p2, %p1188_p8 }
  0x7c   : > { %1196 = shalt.err (!%p1193_p9)
}
  0x7d   : > { %s1197_s0 = scalar_lea.vmem %s327_s1, 64  ;;  %s1347_s14 = smov [#allocation8]  }
  0x7e   : > { %p1198_p3 = scmp.ne.s32.totalorder %s327_s1, %s1197_s0  ;;  %s1202_s29 = sshll.u32 %s1347_s14, 4  ;;  %s1203_s29 = int_to_ptr.vmem [resolvable:$false] %s1202_s29 }
  0x7f   : > { %s1204_s13 = scalar_lea.vmem %s1203_s29, 128  ;;  %p1205_p4 = scmp.lt.s32.totalorder %s327_s1, %s1203_s29 }
  0x80   : > { %p1200_p6 = pnand %p1198_p3, %p1466_p1  ;;  %p1206_p12 = scmp.lt.s32.totalorder %s1204_s13, %s1197_s0 }
  0x82   : > { %p1201_p11 = pneg %p1200_p6  ;;  %p1207_p5 = por %p1206_p12, %p1205_p4 }
  0x84   : > { %p1208_p7 = pnand %p1207_p5, %p1201_p11 }
  0x86   : > { %1211 = shalt.err (!%p1208_p7)
}
  0x87   : > { %1025 = dma.hbm_to_vmem [thread:$0]  (!%p1452_p13), %s1550_s17, 64, %s327_s1, %s316_s22  }
  0x88   : > { %p1889_p8 = scmp.ne.s32.totalorder %s1887_s10, 0 }
  0x89   : > { %s1572_s9 = sand.u32 (!%p1889_p8), 1, %s1332_s25   ;;  %p1890_p1 = scmp.ne.s32.totalorder (!%p1889_p8), %s1880_s11, 0 }
  0x8a   : > { %341 = sbr.rel (%p1889_p8) target bundleno = 472 (0x1d8), region = 40  ;;  %s344_s18 = scalar_lea.sflag (!%p1889_p8), [#allocation3], %s1572_s9 }
  0x8b   : > { %s992_s20 = smul.u32 (!%p1889_p8), 24, %s1572_s9 }
  0x8d   : > { %s347_s19 = scalar_lea.vmem (!%p1889_p8), [#allocation2], %s992_s20 }
  0x8f   : > { %1307 = dma.done.wait (%p1890_p1), %s344_s18, 384  }
  0x90   : > { %1309 = vsyncadd (%p1890_p1), %s344_s18, 4294966912  ;;  %s352_s15 = sand.u32 1, %s1414_s28   ;;  %s355_s17 = scalar_lea.vmem [#allocation5], %s1572_s9 }
  0x91   : > { %s353_s10 = scalar_lea.sflag [#allocation6], %s352_s15 }
  0x92   : > { %1311 = dma.done.wait (%p1890_p1), %s353_s10, 144  }
  0x93   : > { %1313 = vsyncadd (%p1890_p1), %s353_s10, 4294967152  ;;  %s981_s1 = sshll.u32 %s1572_s9, 3  ;;  %s982_s22 = sshll.u32 %s1572_s9, 2 }
  0x94   : > { %s364_s21 = scalar_lea.vmem [#allocation7], %s981_s1  ;;  %s370_s30 = scalar_lea.sflag [#allocation9], %s1572_s9 }
  0x95   : > { %s373_s23 = scalar_lea.vmem [#allocation8], %s982_s22 }
  0x96   : > { %1315 = dma.done.wait (%p1890_p1), %s370_s30, 64  }
  0x97   : > { %1317 = vsyncadd (%p1890_p1), %s370_s30, 4294967232  ;;  %v589_v0 = vld [vmem:[%s364_s21] sm:$0xff]  ;;  %v590_v1 = vld [vmem:[%s373_s23] sm:$0xf]  ;;  %v435_v2 = vlaneseq  ;;  %v1348_v3 = vmov 1966171168  }
  0x98   : > { %v621_v4 = vunpack.c.l.s4 %v1348_v3  ;;  %1074 = vrcp.f32 %v590_v1  ;;  %v706_v5 = vrot.slane %v590_v1, 4  ;;  %v1595_v6 = vld [vmem:[%s347_s19] sm:$0xff]  ;;  %v1597_v7 = vld [vmem:[%s347_s19 + $0x8] sm:$0xff]  ;;  %v593_v8 = vrot.slane %v589_v0, 6  ;;  %v1599_v10 = vld [vmem:[%s347_s19 + $0x10] sm:$0xff]  ;;  %p428_p13 = scmp.lt.s32.totalorder %s1414_s28, 1 }
  0x99   : > { %v600_v9 = vrot.slane %v589_v0, 4  ;;  %v464_v11 = vand.u32 2147483647, %v1595_v6  ;;  %v465_v12 = vand.u32 2147483647, %v1597_v7  ;;  %v1603_v16 = vshrl.u32 %v435_v2, 7 }
  0x9a   : > { %1076 = vrcp.f32 %v706_v5  ;;  %v595_v13 = vsub.f32 %v589_v0, %v593_v8  ;;  %v622_v17 = vunpack.c.0.s8 %v621_v4  ;;  %v466_v18 = vand.u32 2147483647, %v1599_v10  ;;  %s429_s11 = scalar_select %p428_p13, %s1414_s28, 1  ;;  %v434_v50 = vld [vmem:[%s355_s17] sm:$0x1] }
  0x9b   : > { %v602_v14 = vmin.f32 %v589_v0, %v600_v9  ;;  %v603_v15 = vmax.f32 %v589_v0, %v600_v9  ;;  %v467_v22 = vsub.f32 0.0, %v464_v11  ;;  %v468_v23 = vsub.f32 0.0, %v465_v12  ;;  %s1733_s0 = sshll.u32 %s1414_s28, 4  ;;  %s415_s14 = scalar_lea.vmem [#allocation10], %s1572_s9 }
  0x9c   : > { %v597_v19 = vrot.slane %v595_v13, 1  ;;  %v469_v27 = vsub.f32 0.0, %v466_v18  ;;  %v625_v28 = vsub.s32 %v622_v17, %v1603_v16  ;;  %s430_s26 = scalar_lea.vmem %s1864_s4, %s429_s11  ;;  %v1618_v46 = vsub.s32 0, %v1603_v16  ;;  %s754_s29 = sshll.u32 %s415_s14, 4  ;;  %s1745_s29 = int_to_ptr.vmem [resolvable:$true] %s754_s29 }
  0x9d   : > { %v605_v20 = vrot.slane %v603_v15, 6  ;;  %v646_v21 = vrot.slane %v602_v14, 6  ;;  %v470_v29 = vmul.f32 1.442695, %v467_v22  ;;  %v472_v30 = vmul.f32 1.442695, %v468_v23  ;;  %s1743_s10 = scalar_lea.hbm %s1865_s5, %s1733_s0  ;;  %s1758_s23 = scalar_lea.hbm %s1866_s6, %s1733_s0 }
  0x9e   : > { %v599_v24 = vmul.f32 %v597_v19, %v595_v13  ;;  %v474_v34 = vmul.f32 1.442695, %v469_v27  ;;  %v591_v47 = vld [vmem:[%s430_s26] sm:$0x1]  ;;  %v1626_v56 = vadd.s32 16, %v1603_v16  ;;  %v454_v57 = vrot.slane %v434_v50, %v1618_v46  ;;  %s427_s13 = scalar_lea.vmem [#allocation13], %s1572_s9 }
  0x9f   : > { %v607_v25 = vsub.f32 %v602_v14, %v605_v20  ;;  %v648_v26 = vsub.f32 %v603_v15, %v646_v21  ;;  %1078 = vpow2.f32 %v470_v29  ;;  %vm618_vm0 = vcmp.gt.f32.partialorder %v591_v47, 0.5  ;;  %s780_s20 = sshll.u32 %s427_s13, 4  ;;  %s421_s1 = scalar_lea.vmem [#allocation11], %s1572_s9  ;;  %s1752_s20 = int_to_ptr.vmem [resolvable:$true] %s780_s20 }
  0xa0   : > { %v614_v32 = vrot.slane %v599_v24, 4  ;;  %1080 = vpow2.f32 %v472_v30  ;;  %v1623_v53 = vrot.slane %v591_v47, %v1618_v46  ;;  %vm716_vm1 = vcmask 1043456   ;;  %s1750_s22 = sshll.u32 %s421_s1, 4  ;;  %s734_s11 = scalar_lea.sflag [#allocation4], %s1572_s9  ;;  %s1782_s22 = int_to_ptr.vmem [resolvable:$true] %s1750_s22 }
  0xa1   : > { %v608_v31 = vmax.f32 %v607_v25, 0.0  ;;  %v650_v33 = vrot.slane %v648_v26, 1  ;;  %1082 = vpow2.f32 %v474_v34  ;;  %v437_v1 = vadd.s32 8, %v1603_v16  ;;  %s1212_s8 = scalar_lea.vmem %s1745_s29, 16  ;;  %p1897_p0 = scmp.ne.s32.totalorder %s1881_s12, 0 }
  0xa2   : > { %v616_v36 = vadd.f32 %v614_v32, %v599_v24  ;;  %vm441_vm2 = vcmp.lt.s32.totalorder %v1626_v56, 20  ;;  %vm457_vm3 = vcmp.eq.s32.totalorder %v1626_v56, %v454_v57  ;;  %vm455_vm4 = vcmp.eq.s32.totalorder %v1603_v16, %v454_v57  ;;  %p1213_p10 = scmp.ne.s32.totalorder %s1745_s29, %s1212_s8  ;;  %s1350_s16 = smov [#allocation10]  }
  0xa3   : > { %v610_v35 = vrot.slane %v608_v31, 1  ;;  %v652_v37 = vmul.f32 %v650_v33, %v648_v26  ;;  %vm456_vm5 = vcmp.eq.s32.totalorder %v437_v1, %v454_v57  ;;  %vm460_vm6 = vmand %vm457_vm3, %vm441_vm2  ;;  %vm448_vm7 = vcmp.ge.s32.totalorder %v434_v50, 0  ;;  %s1216_s26 = sshll.u32 %s1350_s16, 4  ;;  %s1217_s26 = int_to_ptr.vmem [resolvable:$false] %s1216_s26 }
  0xa4   : > { %v1349_v9 = vmov 0.0   ;;  %v476_v14 = vmax.f32 %v1595_v6, 0.0  ;;  %v477_v15 = vmax.f32 %v1597_v7, 0.0  ;;  %v478_v18 = vmax.f32 %v1599_v10, 0.0  ;;  %p1214_p2 = pnand %p1213_p10, %p1897_p0  ;;  %s1218_s18 = scalar_lea.vmem %s1217_s26, 32 }
  0xa5   : > { %v1075_v38 = vpop.eup %1074  ;;  %v1611_v39 = vmul.f32 %v610_v35, %v608_v31  ;;  %v660_v40 = vrot.slane %v652_v37, %v625_v28  ;;  %v1653_v11 = vsel %vm455_vm4, 1.0, %v1349_v9  ;;  %v1656_v12 = vsel %vm456_vm5, 1.0, %v1349_v9  ;;  %p1219_p3 = scmp.lt.s32.totalorder %s1745_s29, %s1217_s26  ;;  %p1220_p6 = scmp.lt.s32.totalorder %s1218_s18, %s1212_s8 }
  0xa6   : > { %v704_v44 = vmul.f32 %v1075_v38, %v589_v0  ;;  %v1659_v13 = vsel %vm460_vm6, 1.0, %v1349_v9  ;;  %v479_v16 = vmul.f32 %v1653_v11, %v1595_v6  ;;  %v480_v17 = vmul.f32 %v1656_v12, %v1597_v7  ;;  %p1215_p9 = pneg %p1214_p2 }
  0xa7   : > { %v1077_v41 = vpop.eup %1076  ;;  %v617_v42 = vsub.f32 %v616_v36, %v1611_v39  ;;  %v667_v43 = vrot.slane %v660_v40, %v625_v28  ;;  %v481_v19 = vmul.f32 %v1659_v13, %v1599_v10  ;;  %v1674_v22 = vsel %vm448_vm7, 1.0, %v1349_v9  ;;  %p1221_p11 = por %p1220_p6, %p1219_p3 }
  0xa8   : > { %v709_v45 = vmul.f32 %v1077_v41, %v589_v0  ;;  %v482_v24 = vsub.f32 %v476_v14, %v479_v16  ;;  %v483_v25 = vsub.f32 %v477_v15, %v480_v17  ;;  %vm515_vm8 = vcmp.ge.f32.partialorder %v1595_v6, 0.0 }
  0xa9   : > { %v626_v48 = vrot.slane %v617_v42, %v625_v28  ;;  %v668_v52 = vcombine.high %v667_v43, %v667_v43  ;;  %vm516_vm9 = vcmp.ge.f32.partialorder %v1597_v7, 0.0  ;;  %v484_v27 = vsub.f32 %v478_v18, %v481_v19  ;;  %p1222_p4 = pnand %p1221_p11, %p1215_p9 }
  0xaa   : > { %v711_v49 = vrot.slane %v709_v45, 4  ;;  %vm517_vm10 = vcmp.ge.f32.partialorder %v1599_v10, 0.0  ;;  %v536_v32 = vsub.f32 1.0, %v1653_v11  ;;  %v537_v33 = vsub.f32 1.0, %v1656_v12 }
  0xab   : > { %v633_v51 = vrot.slane %v626_v48, %v625_v28  ;;  %v1633_v61 = vsel %vm618_vm0, %v668_v52, 1.0  ;;  %v538_v37 = vsub.f32 1.0, %v1659_v13  ;;  %v551_v38 = vmul.f32 0.25, %v1653_v11 }
  0xac   : > { %v713_v54 = vsub.f32 %v704_v44, %v711_v49  ;;  %v1629_v59 = vpop.eup %1078  ;;  %1084 = vrcp.f32 %v1633_v61  ;;  %v552_v42 = vmul.f32 0.25, %v1656_v12  ;;  %v553_v43 = vmul.f32 0.25, %v1659_v13 }
  0xad   : > { %v634_v55 = vcombine.high %v633_v51, %v633_v51  ;;  %v1635_v62 = vpop.eup %1080  ;;  %v485_v2 = vadd.f32 1.0, %v1629_v59  ;;  %v488_v20 = vmul.f32 -0.5, %v1629_v59  ;;  %v491_v30 = vand.u32 2147483647, %v1629_v59 }
  0xae   : > { %v714_v58 = vand.u32 2147483647, %v713_v54  ;;  %v1638_v0 = vpop.eup %1082  ;;  %v494_v5 = vadd.f32 1.0, %v1635_v62  ;;  %v497_v21 = vmul.f32 -0.5, %v1635_v62  ;;  %v500_v35 = vand.u32 2147483647, %v1635_v62 }
  0xaf   : > { %v1631_v60 = vsel %vm618_vm0, %v634_v55, 1.0  ;;  %1086 = vlog2.f32 %v485_v2  ;;  %v503_v8 = vadd.f32 1.0, %v1638_v0  ;;  %v506_v23 = vmul.f32 -0.5, %v1638_v0 }
  0xb0   : > { %v715_v63 = vmul.f32 %v714_v58, %v1623_v53  ;;  %v641_v4 = vrot.slane %v1631_v60, %v1618_v46  ;;  %1088 = vlog2.f32 %v494_v5  ;;  %v671_v26 = vsub.f32 %v1633_v61, %v1631_v60 }
  0xb1   : > { %1090 = vlog2.f32 %v503_v8  ;;  %v489_v28 = vadd.f32 1.0, %v488_v20  ;;  %v498_v31 = vadd.f32 1.0, %v497_v21  ;;  %v507_v36 = vadd.f32 1.0, %v506_v23 }
  0xb2   : > { %v717_v3 = vsel %vm716_vm1, %v715_v63, 0.0  ;;  %1092 = vrcp.f32 %v641_v4  ;;  %v509_v41 = vand.u32 2147483647, %v1638_v0  ;;  %v554_v44 = vmul.f32 0.75, %v536_v32 }
  0xb3   : > { %718 = vadd.xlane.f32.xlu1 %v717_v3  ;;  %1094 = vrcp.f32 %v485_v2  ;;  %v490_v48 = vmul.f32 %v1629_v59, %v489_v28  ;;  %v518_v49 = vsel %vm515_vm8, 1.0, %v1629_v59  ;;  %vm1695_vm11 = vcmp.lt.f32.partialorder %v491_v30, 0.0004427343 }
  0xb4   : > { %1096 = vrcp.f32 %v494_v5  ;;  %v499_v55 = vmul.f32 %v1635_v62, %v498_v31  ;;  %v519_v57 = vsel %vm516_vm9, 1.0, %v1635_v62  ;;  %vm1703_vm12 = vcmp.lt.f32.partialorder %v500_v35, 0.0004427343 }
  0xb5   : > { %1098 = vrcp.f32 %v503_v8  ;;  %v508_v59 = vmul.f32 %v1638_v0, %v507_v36  ;;  %v520_v61 = vsel %vm517_vm10, 1.0, %v1638_v0  ;;  %vm1711_vm13 = vcmp.lt.f32.partialorder %v509_v41, 0.0004427343 }
  0xb6   : > { %v555_v7 = vmul.f32 0.75, %v537_v33  ;;  %v556_v62 = vmul.f32 0.75, %v538_v37  ;;  %v557_v20 = vadd.f32 %v554_v44, %v551_v38  ;;  %vm692_vm14 = vcmask 1040384  }
  0xb8   : > { %v558_v30 = vadd.f32 %v555_v7, %v552_v42  ;;  %v559_v31 = vadd.f32 %v556_v62, %v553_v43 }
  0xb9   : > { %v1085_v29 = vpop.eup %1084 }
  0xba   : > { %v673_v50 = vmul.f32 %v1085_v29, %v671_v26 }
  0xbc   : > { %v1087_v34 = vpop.eup %1086  ;;  %v678_v14 = vrot.slane %v673_v50, %v1618_v46 }
  0xbd   : > { %v1089_v40 = vpop.eup %1088  ;;  %v487_v47 = vmul.f32 0.6931472, %v1087_v34 }
  0xbe   : > { %v1091_v45 = vpop.eup %1090  ;;  %v496_v54 = vmul.f32 0.6931472, %v1089_v40 }
  0xbf   : > { %v1093_v51 = vpop.eup %1092  ;;  %v505_v6 = vmul.f32 0.6931472, %v1091_v45  ;;  %v493_v4 = vsel %vm1695_vm11, %v490_v48, %v487_v47 }
  0xc0   : > { %v1095_v58 = vpop.eup %1094  ;;  %v644_v8 = vmul.f32 %v1093_v51, %v1611_v39  ;;  %v502_v10 = vsel %vm1703_vm12, %v499_v55, %v496_v54  ;;  %v512_v21 = vadd.f32 %v493_v4, %v482_v24 }
  0xc1   : > { %v1097_v63 = vpop.eup %1096  ;;  %v525_v2 = vmul.f32 %v1095_v58, %v518_v49  ;;  %v511_v17 = vsel %vm1711_vm13, %v508_v59, %v505_v6  ;;  %v513_v28 = vadd.f32 %v502_v10, %v483_v25 }
  0xc2   : > { %v1099_v3 = vpop.eup %1098  ;;  %v527_v5 = vmul.f32 %v1097_v63, %v519_v57  ;;  %v514_v34 = vadd.f32 %v511_v17, %v484_v27  ;;  %v680_v36 = vsub.f32 %v644_v8, %v678_v14  ;;  %v560_v47 = vmul.f32 %v557_v20, %v512_v21 }
  0xc3   : > { %v529_v0 = vmul.f32 %v1099_v3, %v520_v61  ;;  %v530_v15 = vmul.f32 %v525_v2, %v1653_v11  ;;  %v533_v16 = vsub.f32 1.0, %v525_v2  ;;  %v561_v25 = vmul.f32 %v558_v30, %v513_v28 }
  0xc4   : > { %v531_v18 = vmul.f32 %v527_v5, %v1656_v12  ;;  %v534_v19 = vsub.f32 1.0, %v527_v5  ;;  %v570_v12 = vrot.slane %v1674_v22, %v1618_v46  ;;  %v562_v38 = vmul.f32 %v559_v31, %v514_v34 }
  0xc5   : > { %v532_v23 = vmul.f32 %v529_v0, %v1659_v13  ;;  %v535_v39 = vsub.f32 1.0, %v529_v0  ;;  %v539_v26 = vmul.f32 %v536_v32, %v533_v16  ;;  %v983_v13 = vsel %vm441_vm2, 1.0, %v1349_v9 }
  0xc6   : > { %v540_v29 = vmul.f32 %v537_v33, %v534_v19  ;;  %v681_v27 = vsub.f32 1.0, %v680_v36  ;;  %v574_v44 = vmul.f32 %v983_v13, %v570_v12 }
  0xc7   : > { %v541_v35 = vmul.f32 %v538_v37, %v535_v39  ;;  %v542_v11 = vadd.f32 %v539_v26, %v530_v15 }
  0xc8   : > { %v543_v40 = vadd.f32 %v540_v29, %v531_v18  ;;  %v688_v51 = vmul.f32 %v1623_v53, %v681_v27 }
  0xc9   : > { %v544_v41 = vadd.f32 %v541_v35, %v532_v23  ;;  %v545_v45 = vsub.f32 1.0, %v542_v11 }
  0xca   : > { %v546_v24 = vsub.f32 1.0, %v543_v40  ;;  %v690_v56 = vrot.slane %v688_v51, 2 }
  0xcb   : > { %v547_v32 = vsub.f32 1.0, %v544_v41  ;;  %v548_v33 = vmul.f32 %v545_v45, %v545_v45 }
  0xcc   : > { %v549_v37 = vmul.f32 %v546_v24, %v546_v24  ;;  %v693_v54 = vsel %vm692_vm14, %v690_v56, 0.0 }
  0xcd   : > { %v550_v42 = vmul.f32 %v547_v32, %v547_v32  ;;  %v563_v43 = vmul.f32 %v560_v47, %v548_v33 }
  0xce   : > { %v564_v48 = vmul.f32 %v561_v25, %v549_v37 }
  0xcf   : > { %v565_v49 = vmul.f32 %v562_v38, %v550_v42  ;;  %v575_v50 = vmul.f32 %v570_v12, %v563_v43 }
  0xd0   : > { %v576_v46 = vmul.f32 %v570_v12, %v564_v48 }
  0xd1   : > { %v577_v22 = vmul.f32 %v574_v44, %v565_v49 }
  0xd2   : > { %v578_v52 = vadd.f32 %v576_v46, %v575_v50 }
  0xd4   : > { %v579_v9 = vadd.f32 %v578_v52, %v577_v22 }
  0xd6   : > { %580 = vadd.xlane.f32.xlu0 %v579_v9 }
  0xda   : > { %694 = vadd.xlane.f32.xlu0 %v693_v54 }
 0x13c   : > { %v719_v55 = vpop.xlane.xlu1 %718 }
 0x13d   : > { %v720_v57 = vrot.slane %v719_v55, 4 }
 0x13f   : > { %v721_v58 = vadd.f32 %v720_v57, %v719_v55 }
 0x141   : > { %v722_v61 = vrot.slane %v721_v58, 2 }
 0x143   : > { %v723_v62 = vadd.f32 %v722_v61, %v721_v58 }
 0x145   : > { %v724_v14 = vrot.slane %v723_v62, 1 }
 0x147   : > { %v725_v15 = vadd.f32 %v724_v14, %v723_v62 }
 0x15f   : > { %v581_v60 = vpop.xlane.xlu0 %580 }
 0x160   : > { %v582_v6 = vrot.slane %v581_v60, 4 }
 0x162   : > { %v583_v59 = vadd.f32 %v582_v6, %v581_v60 }
 0x163   : > { %v695_v63 = vpop.xlane.xlu0 %694 }
 0x164   : > { %v584_v1 = vrot.slane %v583_v59, 2  ;;  %v696_v53 = vrot.slane %v695_v63, 4 }
 0x166   : > { %v697_v2 = vadd.f32 %v696_v53, %v695_v63  ;;  %v585_v7 = vadd.f32 %v584_v1, %v583_v59 }
 0x168   : > { %v698_v3 = vrot.slane %v697_v2, 2  ;;  %v586_v4 = vrot.slane %v585_v7, 1 }
 0x16a   : > { %v699_v5 = vadd.f32 %v698_v3, %v697_v2  ;;  %v587_v8 = vadd.f32 %v586_v4, %v585_v7 }
 0x16c   : > { %993 = vpush %v587_v8  ;;  %v700_v10 = vrot.slane %v699_v5, 1 }
 0x16e   : > { %v701_v0 = vadd.f32 %v700_v10, %v699_v5 }
 0x170   : > { %995 = vpush %v701_v0 }
 0x171   : > { %997 = vpush %v725_v15 }
 0x19d   : > { %s994_s17 = spop %993 }
 0x19e   : > { %v727_v16 = vstv %s994_s17 }
 0x19f   : > { %728 = vst [vmem:[%s415_s14] sm:$0x1] %v727_v16 }
 0x1a0   : > { %1225 = shalt.err (!%p1222_p4)
}
 0x1a1   : > { %s1226_s14 = scalar_lea.hbm %s1743_s10, 16  ;;  %s1230_s21 = scalar_lea.hbm %s1865_s5, 32 }
 0x1a2   : > { %p1227_p12 = scmp.ne.s32.totalorder %s1743_s10, %s1226_s14  ;;  %p1231_p8 = scmp.lt.s32.totalorder %s1743_s10, %s1865_s5 }
 0x1a3   : > { %p1232_p1 = scmp.lt.s32.totalorder %s1230_s21, %s1226_s14 }
 0x1a4   : > { %p1228_p5 = pnand %p1227_p12, %p1897_p0 }
 0x1a5   : > { %p1233_p13 = por %p1232_p1, %p1231_p8 }
 0x1a6   : > { %p1229_p7 = pneg %p1228_p5 }
 0x1a8   : > { %p1234_p10 = pnand %p1233_p13, %p1229_p7 }
 0x1aa   : > { %1237 = shalt.err (!%p1234_p10)
}
 0x1ab   : > { %1007 = dma.vmem_to_hbm [thread:$0]  (%p1897_p0), %s1745_s29, 16, %s1743_s10, %s734_s11  }
 0x1ac   : > { %s996_s8 = spop %995  ;;  %s1788_s19 = scalar_lea.hbm %s1867_s7, %s1733_s0 }
 0x1ad   : > { %v729_v17 = vstv %s996_s8  ;;  %s998_s26 = spop %997  ;;  %s1796_s29 = scalar_lea.sflag [#allocation12], %s352_s15 }
 0x1ae   : > { %730 = vst [vmem:[%s421_s1] sm:$0x1] %v729_v17  ;;  %v731_v18 = vstv %s998_s26  ;;  %s1238_s10 = scalar_lea.vmem %s1782_s22, 16  ;;  %s1351_s11 = smov [#allocation11]  }
 0x1af   : > { %732 = vst [vmem:[%s427_s13] sm:$0x1] %v731_v18  ;;  %p1239_p2 = scmp.ne.s32.totalorder %s1782_s22, %s1238_s10  ;;  %s1242_s17 = sshll.u32 %s1351_s11, 4  ;;  %s1243_s17 = int_to_ptr.vmem [resolvable:$false] %s1242_s17 }
 0x1b0   : > { %s1244_s21 = scalar_lea.vmem %s1243_s17, 32  ;;  %p1245_p6 = scmp.lt.s32.totalorder %s1782_s22, %s1243_s17 }
 0x1b1   : > { %p1240_p9 = pnand %p1239_p2, %p1897_p0  ;;  %p1246_p11 = scmp.lt.s32.totalorder %s1244_s21, %s1238_s10 }
 0x1b3   : > { %p1241_p3 = pneg %p1240_p9  ;;  %p1247_p4 = por %p1246_p11, %p1245_p6 }
 0x1b5   : > { %p1248_p12 = pnand %p1247_p4, %p1241_p3 }
 0x1b7   : > { %1251 = shalt.err (!%p1248_p12)
}
 0x1b8   : > { %s1252_s28 = scalar_lea.hbm %s1758_s23, 16  ;;  %s1256_s0 = scalar_lea.hbm %s1866_s6, 32 }
 0x1b9   : > { %p1253_p5 = scmp.ne.s32.totalorder %s1758_s23, %s1252_s28  ;;  %p1257_p1 = scmp.lt.s32.totalorder %s1758_s23, %s1866_s6 }
 0x1ba   : > { %p1258_p13 = scmp.lt.s32.totalorder %s1256_s0, %s1252_s28 }
 0x1bb   : > { %p1254_p7 = pnand %p1253_p5, %p1897_p0 }
 0x1bc   : > { %p1259_p10 = por %p1258_p13, %p1257_p1 }
 0x1bd   : > { %p1255_p8 = pneg %p1254_p7 }
 0x1bf   : > { %p1260_p2 = pnand %p1259_p10, %p1255_p8 }
 0x1c1   : > { %1263 = shalt.err (!%p1260_p2)
}
 0x1c2   : > { %1008 = dma.vmem_to_hbm [thread:$0]  (%p1897_p0), %s1782_s22, 16, %s1758_s23, %s1796_s29  }
 0x1c3   : > { %s1264_s30 = scalar_lea.vmem %s1752_s20, 16  ;;  %s1352_s16 = smov [#allocation13]  }
 0x1c4   : > { %p1265_p9 = scmp.ne.s32.totalorder %s1752_s20, %s1264_s30  ;;  %s1268_s8 = sshll.u32 %s1352_s16, 4  ;;  %s1269_s8 = int_to_ptr.vmem [resolvable:$false] %s1268_s8 }
 0x1c5   : > { %s1270_s26 = scalar_lea.vmem %s1269_s8, 32  ;;  %p1271_p11 = scmp.lt.s32.totalorder %s1752_s20, %s1269_s8 }
 0x1c6   : > { %p1266_p3 = pnand %p1265_p9, %p1897_p0  ;;  %p1272_p4 = scmp.lt.s32.totalorder %s1270_s26, %s1264_s30 }
 0x1c8   : > { %p1267_p6 = pneg %p1266_p3  ;;  %p1273_p12 = por %p1272_p4, %p1271_p11 }
 0x1ca   : > { %p1274_p5 = pnand %p1273_p12, %p1267_p6 }
 0x1cc   : > { %1277 = shalt.err (!%p1274_p5)
}
 0x1cd   : > { %s1278_s18 = scalar_lea.hbm %s1788_s19, 16  ;;  %s1282_s14 = scalar_lea.hbm %s1867_s7, 32 }
 0x1ce   : > { %p1279_p7 = scmp.ne.s32.totalorder %s1788_s19, %s1278_s18  ;;  %p1283_p13 = scmp.lt.s32.totalorder %s1788_s19, %s1867_s7 }
 0x1cf   : > { %p1284_p10 = scmp.lt.s32.totalorder %s1282_s14, %s1278_s18 }
 0x1d0   : > { %p1280_p8 = pnand %p1279_p7, %p1897_p0 }
 0x1d1   : > { %p1285_p2 = por %p1284_p10, %p1283_p13 }
 0x1d2   : > { %p1281_p1 = pneg %p1280_p8 }
 0x1d4   : > { %p1286_p9 = pnand %p1285_p2, %p1281_p1 }
 0x1d6   : > { %1289 = shalt.err (!%p1286_p9)
}
 0x1d7   : > { %1009 = dma.vmem_to_hbm [thread:$0]  (%p1897_p0), %s1752_s20, 16, %s1788_s19, %s1796_s29  }
 0x1d8 PF: > { %s1898_s17 = sld [smem:[#allocation22_spill]]  ;;  %s792_s21 = sand.u32 1, %s1328_s24  }
 0x1d9   : > { %p1900_p6 = scmp.ge.s32.totalorder %s1340_s27, 2  ;;  %s793_s28 = scalar_lea.sflag [#allocation4], %s792_s21 }
 0x1de   : > { %p1899_p3 = scmp.ne.s32.totalorder %s1898_s17, 0 }
 0x1e0   : > { %p1027_p11 = pnand %p1900_p6, %p1899_p3 }
 0x1e2   : > { %p1028_p4 = pneg %p1027_p11 }
 0x1e4   : > { %1319 = dma.done.wait (%p1028_p4), %s793_s28, 16  }
 0x1e5   : > { %1321 = vsyncadd (%p1028_p4), %s793_s28, 4294967280  ;;  %s1901_s9 = sadd.s32 4294967294, %s1340_s27  }
 0x1e6   : > { %s800_s15 = sand.u32 1, %s1901_s9  }
 0x1e7   : > { %s801_s12 = scalar_lea.sflag [#allocation12], %s800_s15 }
 0x1e8   : > { %1323 = dma.done.wait (%p1028_p4), %s801_s12, 32  }
 0x1e9   : > { %1325 = vsyncadd (%p1028_p4), %s801_s12, 4294967264  ;;  %s1902_s27 = sld [smem:[#allocation20_spill]]  ;;  %s1905_s24 = smov %s1332_s25 }
 0x1ea   : > { %s1903_s20 = sld [smem:[#allocation19_spill]] }
 0x1eb   : > { %s1904_s26 = sld [smem:[#allocation21_spill]] }
 0x1ef   : > { %p30_p0 = scmp.ge.s32.totalorder %s1902_s27, 4  }
 0x1f0   : > { %s1906_s25 = smov %s1903_s20 }
 0x1f1   :  { %32 = sbr.rel (!%p30_p0) target bundleno = 14 (0xe), region = 157 }
 0x1f6   :  { %813 = vsyncpa [#allocation3], 1 }
 0x1f7   :  { %815 = vsyncpa [#allocation3 + $0x1], 1 }
 0x1f8   :  { %816 = vsyncpa [#allocation6], 1 }
 0x1f9   :  { %818 = vsyncpa [#allocation6 + $0x1], 1 }
 0x1fa   :  { %819 = vsyncpa [#allocation9], 1 }
 0x1fb   :  { %821 = vsyncpa [#allocation9 + $0x1], 1 }
 0x1fc   :  { %822 = vsyncpa [#allocation4], 1 }
 0x1fd   :  { %824 = vsyncpa [#allocation4 + $0x1], 1 }
 0x1fe   :  { %825 = vsyncpa [#allocation12], 1 }
 0x1ff   :  { %827 = vsyncpa [#allocation12 + $0x1], 1 }

</bundles_post_ra>
